<compile_context>
chip_gen: v5e
topology: v5e:2x2
jax: 0.10.0
libtpu: 0.0.40
codegen_flags: <defaults>
</compile_context>

<pallas_src>
import functools

import jax
import jax.numpy as jnp
from jax.experimental import pallas as pl
from jax.experimental.pallas import tpu as pltpu

S_PAD = 8        # padded input-feature dim (s_dim=4 -> 8 sublanes for resident W1)
H_PAD = 128      # padded fused hidden dim (20 policy + 15 value -> 128 lanes)
OUT_PAD = 128    # padded fused output dim (a_dim logits + 1 value -> 128 lanes)
MAX_TILE_B = 1024


def net_kernel(x_ref, w1_ref, b1_ref, w2_ref, b2_ref, out_ref):
    """out = relu(x @ W1 + b1) @ W2 + b2 on one batch tile (all f32)."""
    x = x_ref[...]
    h = jnp.dot(x, w1_ref[...], preferred_element_type=jnp.float32) + b1_ref[...]
    h = jnp.maximum(h, 0.0)
    out = jnp.dot(h, w2_ref[...], preferred_element_type=jnp.float32) + b2_ref[...]
    out_ref[...] = out.astype(out_ref.dtype)


def _round_up(n, m):
    return ((n + m - 1) // m) * m


def init_params(key, s_dim, a_dim):
    """Matches set_init: weights ~ N(0, 0.1), biases = 0.

    Weights are stored transposed vs nn.Linear, i.e. (in_features, out_features),
    so forward computes y = x @ W + b.
    """
    ks = jax.random.split(key, 4)
    w_pi1 = 0.1 * jax.random.normal(ks[0], (s_dim, 20), jnp.float32)
    b_pi1 = jnp.zeros((20,), jnp.float32)
    w_pi2 = 0.1 * jax.random.normal(ks[1], (20, a_dim), jnp.float32)
    b_pi2 = jnp.zeros((a_dim,), jnp.float32)
    w_v1 = 0.1 * jax.random.normal(ks[2], (s_dim, 15), jnp.float32)
    b_v1 = jnp.zeros((15,), jnp.float32)
    w_v2 = 0.1 * jax.random.normal(ks[3], (15, 1), jnp.float32)
    b_v2 = jnp.zeros((1,), jnp.float32)
    return (w_pi1, b_pi1, w_pi2, b_pi2, w_v1, b_v1, w_v2, b_v2)


def pack_params(params):
    """One-time packing: fuse the policy/value heads and zero-pad to tile-friendly dims."""
    (w_pi1, b_pi1, w_pi2, b_pi2, w_v1, b_v1, w_v2, b_v2) = params
    s_dim = w_pi1.shape[0]
    a_dim = w_pi2.shape[1]
    h_pi, h_v = w_pi1.shape[1], w_v1.shape[1]  # 20, 15

    w1 = jnp.zeros((S_PAD, H_PAD), jnp.float32)
    w1 = w1.at[:s_dim, :h_pi].set(w_pi1)
    w1 = w1.at[:s_dim, h_pi:h_pi + h_v].set(w_v1)
    b1 = jnp.zeros((1, H_PAD), jnp.float32)
    b1 = b1.at[0, :h_pi].set(b_pi1)
    b1 = b1.at[0, h_pi:h_pi + h_v].set(b_v1)

    w2 = jnp.zeros((H_PAD, OUT_PAD), jnp.float32)   # block-diagonal second layer
    w2 = w2.at[:h_pi, :a_dim].set(w_pi2)
    w2 = w2.at[h_pi:h_pi + h_v, a_dim:a_dim + 1].set(w_v2)
    b2 = jnp.zeros((1, OUT_PAD), jnp.float32)
    b2 = b2.at[0, :a_dim].set(b_pi2)
    b2 = b2.at[0, a_dim:a_dim + 1].set(b_v2)
    return (w1, b1, w2, b2), a_dim


@functools.partial(jax.jit, static_argnames=("a_dim", "max_tile_b"))
def net_forward(x, packed, a_dim, max_tile_b=MAX_TILE_B):
    """Returns (logits, values) like Net.forward."""
    w1, b1, w2, b2 = packed
    B, s_dim = x.shape

    tile_b = min(max_tile_b, _round_up(B, 8))
    b_pad = _round_up(B, tile_b)
    # Zero-pad batch to a multiple of tile_b and features to S_PAD (numerically free).
    x_p = jnp.pad(x.astype(jnp.float32), ((0, b_pad - B), (0, S_PAD - s_dim)))

    out = pl.pallas_call(
        net_kernel,
        out_shape=jax.ShapeDtypeStruct((b_pad, OUT_PAD), jnp.float32),
        grid=(b_pad // tile_b,),
        in_specs=[
            pl.BlockSpec((tile_b, S_PAD), lambda i: (i, 0)),   # x: tiled over batch
            pl.BlockSpec((S_PAD, H_PAD), lambda i: (0, 0)),    # W1: VMEM-resident
            pl.BlockSpec((1, H_PAD), lambda i: (0, 0)),        # b1
            pl.BlockSpec((H_PAD, OUT_PAD), lambda i: (0, 0)),  # W2
            pl.BlockSpec((1, OUT_PAD), lambda i: (0, 0)),      # b2
        ],
        out_specs=pl.BlockSpec((tile_b, OUT_PAD), lambda i: (i, 0)),
        compiler_params=pltpu.CompilerParams(
            dimension_semantics=("parallel",),
        ),
    )(x_p, w1, b1, w2, b2)

    logits = out[:B, :a_dim]
    values = out[:B, a_dim:a_dim + 1]
    return logits, values


def net_forward_ref(x, params):
    (w_pi1, b_pi1, w_pi2, b_pi2, w_v1, b_v1, w_v2, b_v2) = params
    pi1 = jax.nn.relu(x @ w_pi1 + b_pi1)
    logits = pi1 @ w_pi2 + b_pi2
    v1 = jax.nn.relu(x @ w_v1 + b_v1)
    values = v1 @ w_v2 + b_v2
    return logits, values


# TODO(synk): choose_action (Categorical sampling) and loss_func are host-side
# training utilities; only the forward pass is kernelized here.

if __name__ == "__main__":
    key = jax.random.PRNGKey(0)
    s_dim, a_dim = 4, 2
    kx, kp, kx2 = jax.random.split(key, 3)

    params = init_params(kp, s_dim, a_dim)
    packed, a_dim_p = pack_params(params)

    # Small batch (typical RL rollout shape).
    x_small = jax.random.normal(kx, (8, s_dim), jnp.float32)
    logits, values = net_forward(x_small, packed, a_dim_p)
    jax.block_until_ready((logits, values))
    logits_ref, values_ref = net_forward_ref(x_small, params)
    assert logits.shape == (8, a_dim) and values.shape == (8, 1)
    assert jnp.allclose(logits, logits_ref, atol=1e-5)
    assert jnp.allclose(values, values_ref, atol=1e-5)

    # Larger batch exercising the multi-tile parallel grid path.
    x_big = jax.random.normal(kx2, (2048, s_dim), jnp.float32)
    logits_b, values_b = net_forward(x_big, packed, a_dim_p, max_tile_b=512)
    jax.block_until_ready((logits_b, values_b))
    logits_bref, values_bref = net_forward_ref(x_big, params)
    assert jnp.allclose(logits_b, logits_bref, atol=1e-5)
    assert jnp.allclose(values_b, values_bref, atol=1e-5)

    print("KERNEL_OK")
</pallas_src>

<mosaic_0001>
module attributes {stable_mosaic.version = 11 : i64} {
  func.func @net_kernel(%arg0: i32, %arg1: memref<8x8xf32, #tpu.memory_space<vmem>>, %arg2: memref<8x128xf32, #tpu.memory_space<vmem>>, %arg3: memref<1x128xf32, #tpu.memory_space<vmem>>, %arg4: memref<128x128xf32, #tpu.memory_space<vmem>>, %arg5: memref<1x128xf32, #tpu.memory_space<vmem>>, %arg6: memref<8x128xf32, #tpu.memory_space<vmem>>) attributes {dimension_semantics = [#tpu.dimension_semantics<parallel>], iteration_bounds = array<i64: 1>, scalar_prefetch = 0 : i64, scratch_operands = 0 : i64, tpu.core_type = #tpu.core_type<tc>, window_params = [{transform_indices = @transform_0, window_bounds = array<i64: 8, 8>}, {pipeline_mode = #tpu.pipeline_mode<synchronous>, transform_indices = @transform_1, window_bounds = array<i64: 8, 128>}, {pipeline_mode = #tpu.pipeline_mode<synchronous>, transform_indices = @transform_2, window_bounds = array<i64: 1, 128>}, {pipeline_mode = #tpu.pipeline_mode<synchronous>, transform_indices = @transform_3, window_bounds = array<i64: 128, 128>}, {pipeline_mode = #tpu.pipeline_mode<synchronous>, transform_indices = @transform_4, window_bounds = array<i64: 1, 128>}, {transform_indices = @transform_5, window_bounds = array<i64: 8, 128>}]} {
    %c0 = arith.constant 0 : index
    %c0_0 = arith.constant 0 : index
    %0 = vector.load %arg1[%c0, %c0_0] : memref<8x8xf32, #tpu.memory_space<vmem>>, vector<8x8xf32>
    %c0_1 = arith.constant 0 : index
    %c0_2 = arith.constant 0 : index
    %1 = vector.load %arg2[%c0_1, %c0_2] : memref<8x128xf32, #tpu.memory_space<vmem>>, vector<8x128xf32>
    %cst = arith.constant dense<0.000000e+00> : vector<8x128xf32>
    %2 = tpu.matmul %0, %1, %cst {dimension_numbers = #tpu.dot_dimension_numbers<[1], [0], [0], [1], [0, 0, 1, 1], [], []>} : vector<8x8xf32>, vector<8x128xf32>, vector<8x128xf32> -> vector<8x128xf32>
    %c0_3 = arith.constant 0 : index
    %c0_4 = arith.constant 0 : index
    %3 = vector.load %arg3[%c0_3, %c0_4] : memref<1x128xf32, #tpu.memory_space<vmem>>, vector<1x128xf32>
    %4 = vector.broadcast %3 : vector<1x128xf32> to vector<8x128xf32>
    %5 = arith.addf %2, %4 : vector<8x128xf32>
    %cst_5 = arith.constant 0.000000e+00 : f32
    %6 = vector.broadcast %cst_5 : f32 to vector<8x128xf32>
    %7 = arith.maximumf %5, %6 : vector<8x128xf32>
    %c0_6 = arith.constant 0 : index
    %c0_7 = arith.constant 0 : index
    %8 = vector.load %arg4[%c0_6, %c0_7] : memref<128x128xf32, #tpu.memory_space<vmem>>, vector<128x128xf32>
    %cst_8 = arith.constant dense<0.000000e+00> : vector<8x128xf32>
    %9 = tpu.matmul %7, %8, %cst_8 {dimension_numbers = #tpu.dot_dimension_numbers<[1], [0], [0], [1], [0, 0, 1, 1], [], []>} : vector<8x128xf32>, vector<128x128xf32>, vector<8x128xf32> -> vector<8x128xf32>
    %c0_9 = arith.constant 0 : index
    %c0_10 = arith.constant 0 : index
    %10 = vector.load %arg5[%c0_9, %c0_10] : memref<1x128xf32, #tpu.memory_space<vmem>>, vector<1x128xf32>
    %11 = vector.broadcast %10 : vector<1x128xf32> to vector<8x128xf32>
    %12 = arith.addf %9, %11 : vector<8x128xf32>
    %c0_11 = arith.constant 0 : index
    %c0_12 = arith.constant 0 : index
    %13 = vector.load %arg6[%c0_11, %c0_12] : memref<8x128xf32, #tpu.memory_space<vmem>>, vector<8x128xf32>
    tpu.vector_store %arg6[%c0_11, %c0_12], %12 {strides = array<i32>} : memref<8x128xf32, #tpu.memory_space<vmem>>, vector<8x128xf32>,
    return
  }
  func.func @transform_0(%arg0: i32) -> (i32, i32) {
    %c0_i32 = arith.constant 0 : i32
    %c0_i32_0 = arith.constant 0 : i32
    return %arg0, %c0_i32 : i32, i32
  }
  func.func @transform_1(%arg0: i32) -> (i32, i32) {
    %c0_i32 = arith.constant 0 : i32
    %c0_i32_0 = arith.constant 0 : i32
    %c0_i32_1 = arith.constant 0 : i32
    return %c0_i32, %c0_i32_0 : i32, i32
  }
  func.func @transform_2(%arg0: i32) -> (i32, i32) {
    %c0_i32 = arith.constant 0 : i32
    %c0_i32_0 = arith.constant 0 : i32
    %c0_i32_1 = arith.constant 0 : i32
    return %c0_i32, %c0_i32_0 : i32, i32
  }
  func.func @transform_3(%arg0: i32) -> (i32, i32) {
    %c0_i32 = arith.constant 0 : i32
    %c0_i32_0 = arith.constant 0 : i32
    %c0_i32_1 = arith.constant 0 : i32
    return %c0_i32, %c0_i32_0 : i32, i32
  }
  func.func @transform_4(%arg0: i32) -> (i32, i32) {
    %c0_i32 = arith.constant 0 : i32
    %c0_i32_0 = arith.constant 0 : i32
    %c0_i32_1 = arith.constant 0 : i32
    return %c0_i32, %c0_i32_0 : i32, i32
  }
  func.func @transform_5(%arg0: i32) -> (i32, i32) {
    %c0_i32 = arith.constant 0 : i32
    %c0_i32_0 = arith.constant 0 : i32
    return %arg0, %c0_i32 : i32, i32
  }
}

</mosaic_0001>

<bundles_post_ra>
// kernel: net_forward.1
= control target key start
LH: loop header
LB: loop body
LE: loop exit
PB: predicated region body
PF: predicated region fallthrough
CT: control target
= control target key end

     0   :  { %10 = vsyncpa [#allocation3], 0  ;;  %s145_s21 = smov [#allocation2]   ;;  %s146_s23 = smov 128   ;;  %s196_s0 = inlined_call_operand.vmem [shape: f32[8,8], index: 0, kind: input, shape index: {}]   ;;  %s197_s1 = inlined_call_operand.vmem [shape: f32[8,128], index: 1, kind: input, shape index: {}]   ;;  %s198_s2 = inlined_call_operand.vmem [shape: f32[1,128], index: 2, kind: input, shape index: {}]   ;;  %s199_s3 = inlined_call_operand.hbm [shape: f32[128,128], index: 3, kind: input, shape index: {}]   ;;  %s200_s4 = inlined_call_operand.vmem [shape: f32[1,128], index: 4, kind: input, shape index: {}]   ;;  %s201_s5 = inlined_call_operand.vmem [shape: f32[8,128], index: 5, kind: output, shape index: {}]  }
   0x1   :  { %s21_s20 = sshll.u32 %s199_s3, 4  ;;  %s23_s22 = sshll.u32 %s145_s21, 4  ;;  %s22_s20 = int_to_ptr.hbm [resolvable:$true] %s21_s20  ;;  %s24_s22 = int_to_ptr.vmem [resolvable:$true] %s23_s22 }
   0x2   :  { %s147_s24 = smov 8  }
   0x3   :  { %29 = dma.hbm_to_vmem [thread:$0]  %s22_s20, 2048, %s24_s22, [#allocation3], %s146_s23, %s146_s23, %s147_s24  }
   0x4   :  { %143 = dma.done.wait [#allocation3], 2048  }
   0x5   :  { %144 = vsyncadd [#allocation3], 4294965248  ;;  %vm42_vm0 = vcmask 64512   ;;  %v37_v0 = vld [vmem:[%s197_s1] sm:$0xff]  ;;  %v82_v2 = vld [vmem:[#allocation2 + $0x78] sm:$0xff] }
   0x6   :  { %v36_v1 = vld [vmem:[%s196_s0] sm:$0xff]  ;;  %61 = vmatpush.msra.mxu0 %v37_v0  ;;  %87 = vmatpush.msra.mxu1 %v82_v2  ;;  %v81_v3 = vld [vmem:[#allocation2 + $0x70] sm:$0xff]  ;;  %v80_v4 = vld [vmem:[#allocation2 + $0x68] sm:$0xff] }
   0x7   :  { %113 = vmatmul.msk.f32.vlgmr.msra.gmra.mxu0 %vm42_vm0, %v36_v1  ;;  %v79_v5 = vld [vmem:[#allocation2 + $0x60] sm:$0xff]  ;;  %v78_v6 = vld [vmem:[#allocation2 + $0x58] sm:$0xff]  ;;  %v77_v7 = vld [vmem:[#allocation2 + $0x50] sm:$0xff] }
   0x8   :  { %88 = vmatpush.msra.mxu1 %v81_v3  ;;  %v76_v8 = vld [vmem:[#allocation2 + $0x48] sm:$0xff]  ;;  %v75_v9 = vld [vmem:[#allocation2 + $0x40] sm:$0xff]  ;;  %v74_v10 = vld [vmem:[#allocation2 + $0x38] sm:$0xff] }
   0x9   :  { %v73_v11 = vld [vmem:[#allocation2 + $0x30] sm:$0xff]  ;;  %v72_v12 = vld [vmem:[#allocation2 + $0x28] sm:$0xff]  ;;  %v71_v13 = vld [vmem:[#allocation2 + $0x20] sm:$0xff] }
   0xa   :  { %89 = vmatpush.msra.mxu1 %v80_v4  ;;  %v70_v14 = vld [vmem:[#allocation2 + $0x18] sm:$0xff]  ;;  %v69_v15 = vld [vmem:[#allocation2 + $0x10] sm:$0xff]  ;;  %v68_v16 = vld [vmem:[#allocation2 + $0x8] sm:$0xff] }
   0xb   :  { %v67_v17 = vld [vmem:[#allocation2] sm:$0xff] }
   0xc   :  { %90 = vmatpush.msra.mxu1 %v79_v5  ;;  %v117_v18 = vld [vmem:[%s198_s2] ss:$0 sm:$0xff] }
   0xd   :  { %v118_v22 = vld [vmem:[%s200_s4] ss:$0 sm:$0xff] }
   0xe   :  { %91 = vmatpush.msra.mxu1 %v78_v6 }
  0x10   :  { %92 = vmatpush.msra.mxu1 %v77_v7 }
  0x12   :  { %93 = vmatpush.msra.mxu1 %v76_v8 }
  0x14   :  { %94 = vmatpush.msra.mxu1 %v75_v9 }
  0x16   :  { %95 = vmatpush.msra.mxu1 %v74_v10 }
  0x18   :  { %96 = vmatpush.msra.mxu1 %v73_v11 }
  0x1a   :  { %97 = vmatpush.msra.mxu1 %v72_v12 }
  0x1c   :  { %98 = vmatpush.msra.mxu1 %v71_v13 }
  0x1e   :  { %99 = vmatpush.msra.mxu1 %v70_v14 }
  0x20   :  { %100 = vmatpush.msra.mxu1 %v69_v15 }
  0x22   :  { %101 = vmatpush.msra.mxu1 %v68_v16 }
  0x24   :  { %102 = vmatpush.msra.mxu1 %v67_v17 }
  0x84   :  { %v63_v19 = vpop.f32.mrf.mxu0 }
  0x85   :  { %v64_v20 = vadd.f32 %v117_v18, %v63_v19 }
  0x87   :  { %v66_v21 = vmax.f32 %v64_v20, 0.0 }
  0x89   :  { %103 = vmatmul.f32.vlgmr.msra.gmra.mxu1 %v66_v21 }
 0x106   :  { %v104_v23 = vpop.f32.mrf.mxu1 }
 0x107   :  { %v105_v24 = vadd.f32 %v118_v22, %v104_v23 }
 0x109   :  { %107 = vst [vmem:[%s201_s5] sm:$0xff] %v105_v24 }
 0x10a   :  { %112 = vsyncpa [#allocation3], 1 }

</bundles_post_ra>
